<compile_context>
chip_gen: v7x
topology: tpu7x:2x2x1
jax: 0.10.0
libtpu: 0.0.40
codegen_flags: <defaults>
</compile_context>

<pallas_src>
import jax
import jax.numpy as jnp
from jax.experimental import pallas as pl
from jax.experimental.pallas import tpu as pltpu

HIDDEN = 100  # fixed by the module definition (nn.Linear(input_size, 100))


def _round_up(x: int, m: int) -> int:
    return ((x + m - 1) // m) * m


def mlp_kernel(x_ref, w1_ref, b1_ref, w2_ref, b2_ref, o_ref):
    # fc1: (TB, D_in) @ (D_in, HP) + (1, HP) -- f32 accumulation on the MXU.
    h = jnp.dot(x_ref[...], w1_ref[...],
                preferred_element_type=jnp.float32,
                precision=jax.lax.Precision.HIGHEST) + b1_ref[...]
    # sigmoid on the EUP (transcendental) path.
    h = jax.nn.sigmoid(h)
    # fc2: (TB, HP) @ (HP, D_out) + (1, D_out).
    # Padded hidden lanes (sigmoid(0)=0.5) hit all-zero w2 rows -> contribute nothing.
    logits = jnp.dot(h, w2_ref[...],
                     preferred_element_type=jnp.float32,
                     precision=jax.lax.Precision.HIGHEST) + b2_ref[...]
    # Numerically stable log_softmax over the (unpadded) last axis.
    m = jnp.max(logits, axis=-1, keepdims=True)
    shifted = logits - m
    lse = jnp.log(jnp.sum(jnp.exp(shifted), axis=-1, keepdims=True))
    o_ref[...] = (shifted - lse).astype(o_ref.dtype)


def pad_params(w1, b1, w2, b2):
    """One-time prep: pad the hidden dim 100 -> 128 (zero cols of w1, zero rows of w2).

    w1: (D_in, H), b1: (1, H), w2: (H, D_out), b2: (1, D_out)  (weights pre-transposed
    relative to torch.nn.Linear so the kernel computes x @ W + b).
    """
    D_in, H = w1.shape
    D_out = w2.shape[1]
    HP = _round_up(H, 128)
    f32 = jnp.float32
    w1p = jnp.zeros((D_in, HP), f32).at[:, :H].set(w1.astype(f32))
    b1p = jnp.zeros((1, HP), f32).at[:, :H].set(b1.astype(f32))
    w2p = jnp.zeros((HP, D_out), f32).at[:H, :].set(w2.astype(f32))
    b2p = b2.astype(f32).reshape(1, D_out)
    return w1p, b1p, w2p, b2p


def net_forward(x, w1p, b1p, w2p, b2p, *, block_b: int = 1024):
    """x: (B, D_in) f32; padded params from pad_params(). Returns (B, D_out) log-probs."""
    B, D_in = x.shape
    HP = w1p.shape[1]
    D_out = w2p.shape[1]

    # Batch tile: multiple of 8 (f32 sublane), capped at block_b.
    TB = min(_round_up(B, 8), block_b)
    # v7x has 2 TensorCores: if the whole batch fits in one tile but can be split,
    # halve the tile so the "parallel" batch axis spans both cores.
    if pl.cdiv(B, TB) < 2 and B >= 16:
        TB = _round_up(pl.cdiv(B, 2), 8)
    grid_b = pl.cdiv(B, TB)  # ragged tail is fine: rows are independent, OOB writes dropped

    # Per-step VMEM estimate: double-buffered x/out streams + (double-buffered) weights.
    weight_bytes = (D_in * HP + HP + HP * D_out + D_out) * 4
    stream_bytes = 2 * TB * (D_in + D_out) * 4
    vmem_est = 2 * weight_bytes + stream_bytes

    if vmem_est > (12 << 20):
        # Raise the scoped VMEM limit (v5e default 16 MiB) but stay under v7x's 64 MiB.
        compiler_params = pltpu.CompilerParams(
            dimension_semantics=("parallel",),
            vmem_limit_bytes=min(vmem_est + (8 << 20), 48 << 20))
    else:
        compiler_params = pltpu.CompilerParams(
            dimension_semantics=("parallel",))

    out = pl.pallas_call(
        mlp_kernel,
        out_shape=jax.ShapeDtypeStruct((B, D_out), jnp.float32),
        grid_spec=pl.GridSpec(
            grid=(grid_b,),
            in_specs=[
                pl.BlockSpec((TB, D_in), lambda i: (i, 0)),   # x tile (pipelined)
                pl.BlockSpec((D_in, HP), lambda i: (0, 0)),   # weights: VMEM-resident
                pl.BlockSpec((1, HP), lambda i: (0, 0)),
                pl.BlockSpec((HP, D_out), lambda i: (0, 0)),
                pl.BlockSpec((1, D_out), lambda i: (0, 0)),
            ],
            # Last dim == full array dim (D_out), so no 128-padding required.
            out_specs=pl.BlockSpec((TB, D_out), lambda i: (i, 0)),
        ),
        compiler_params=compiler_params,
    )(x, w1p, b1p, w2p, b2p)

    return out


def init_params(key, input_size, output_size):
    # Deterministic init mimicking PyTorch Linear's U(-1/sqrt(fan_in), 1/sqrt(fan_in)).
    k1, k2, k3, k4 = jax.random.split(key, 4)
    bound1 = 1.0 / jnp.sqrt(input_size)
    bound2 = 1.0 / jnp.sqrt(HIDDEN)
    w1 = jax.random.uniform(k1, (input_size, HIDDEN), jnp.float32, -bound1, bound1)
    b1 = jax.random.uniform(k2, (1, HIDDEN), jnp.float32, -bound1, bound1)
    w2 = jax.random.uniform(k3, (HIDDEN, output_size), jnp.float32, -bound2, bound2)
    b2 = jax.random.uniform(k4, (1, output_size), jnp.float32, -bound2, bound2)
    return w1, b1, w2, b2


if __name__ == "__main__":
    key = jax.random.PRNGKey(0)
    kx, kp = jax.random.split(key)

    batch, input_size, output_size = 8, 64, 10
    x = jax.random.normal(kx, (batch, input_size), jnp.float32)
    w1, b1, w2, b2 = init_params(kp, input_size, output_size)

    params = pad_params(w1, b1, w2, b2)          # one-time weight prep
    out = net_forward(x, *params)
    jax.block_until_ready(out)

    # Pure-JAX reference (unpadded weights, f32 matmul precision to match the kernel).
    hi = jnp.dot(x, w1, precision=jax.lax.Precision.HIGHEST) + b1
    logits_ref = jnp.dot(jax.nn.sigmoid(hi), w2,
                         precision=jax.lax.Precision.HIGHEST) + b2
    ref = jax.nn.log_softmax(logits_ref, axis=1)

    assert out.shape == (batch, output_size)
    assert jnp.allclose(out, ref, atol=1e-5, rtol=1e-5)

    print("KERNEL_OK")
</pallas_src>

<mosaic_0001>
module attributes {stable_mosaic.version = 11 : i64} {
  func.func @mlp_kernel(%arg0: i32, %arg1: memref<8x64xf32, #tpu.memory_space<vmem>>, %arg2: memref<64x128xf32, #tpu.memory_space<vmem>>, %arg3: memref<1x128xf32, #tpu.memory_space<vmem>>, %arg4: memref<128x10xf32, #tpu.memory_space<vmem>>, %arg5: memref<1x10xf32, #tpu.memory_space<vmem>>, %arg6: memref<8x10xf32, #tpu.memory_space<vmem>>) attributes {dimension_semantics = [#tpu.dimension_semantics<parallel>], iteration_bounds = array<i64: 1>, scalar_prefetch = 0 : i64, scratch_operands = 0 : i64, tpu.core_type = #tpu.core_type<tc>, window_params = [{transform_indices = @transform_0, window_bounds = array<i64: 8, 64>}, {pipeline_mode = #tpu.pipeline_mode<synchronous>, transform_indices = @transform_1, window_bounds = array<i64: 64, 128>}, {pipeline_mode = #tpu.pipeline_mode<synchronous>, transform_indices = @transform_2, window_bounds = array<i64: 1, 128>}, {pipeline_mode = #tpu.pipeline_mode<synchronous>, transform_indices = @transform_3, window_bounds = array<i64: 128, 10>}, {pipeline_mode = #tpu.pipeline_mode<synchronous>, transform_indices = @transform_4, window_bounds = array<i64: 1, 10>}, {transform_indices = @transform_5, window_bounds = array<i64: 8, 10>}]} {
    %c0 = arith.constant 0 : index
    %c0_0 = arith.constant 0 : index
    %0 = vector.load %arg1[%c0, %c0_0] : memref<8x64xf32, #tpu.memory_space<vmem>>, vector<8x64xf32>
    %c0_1 = arith.constant 0 : index
    %c0_2 = arith.constant 0 : index
    %1 = vector.load %arg2[%c0_1, %c0_2] : memref<64x128xf32, #tpu.memory_space<vmem>>, vector<64x128xf32>
    %cst = arith.constant dense<0.000000e+00> : vector<8x128xf32>
    %2 = tpu.matmul %0, %1, %cst {dimension_numbers = #tpu.dot_dimension_numbers<[1], [0], [0], [1], [0, 0, 1, 1], [], []>, precision = #tpu.contract_precision<fp32>} : vector<8x64xf32>, vector<64x128xf32>, vector<8x128xf32> -> vector<8x128xf32>
    %c0_3 = arith.constant 0 : index
    %c0_4 = arith.constant 0 : index
    %3 = vector.load %arg3[%c0_3, %c0_4] : memref<1x128xf32, #tpu.memory_space<vmem>>, vector<1x128xf32>
    %4 = vector.broadcast %3 : vector<1x128xf32> to vector<8x128xf32>
    %5 = arith.addf %2, %4 : vector<8x128xf32>
    %6 = arith.negf %5 : vector<8x128xf32>
    %7 = math.exp %6 : vector<8x128xf32>
    %cst_5 = arith.constant 1.000000e+00 : f32
    %8 = vector.broadcast %cst_5 : f32 to vector<8x128xf32>
    %9 = arith.addf %8, %7 : vector<8x128xf32>
    %10 = arith.divf %8, %9 : vector<8x128xf32>
    %c0_6 = arith.constant 0 : index
    %c0_7 = arith.constant 0 : index
    %11 = vector.load %arg4[%c0_6, %c0_7] : memref<128x10xf32, #tpu.memory_space<vmem>>, vector<128x10xf32>
    %cst_8 = arith.constant dense<0.000000e+00> : vector<8x10xf32>
    %12 = tpu.matmul %10, %11, %cst_8 {dimension_numbers = #tpu.dot_dimension_numbers<[1], [0], [0], [1], [0, 0, 1, 1], [], []>, precision = #tpu.contract_precision<fp32>} : vector<8x128xf32>, vector<128x10xf32>, vector<8x10xf32> -> vector<8x10xf32>
    %c0_9 = arith.constant 0 : index
    %c0_10 = arith.constant 0 : index
    %13 = vector.load %arg5[%c0_9, %c0_10] : memref<1x10xf32, #tpu.memory_space<vmem>>, vector<1x10xf32>
    %14 = vector.broadcast %13 : vector<1x10xf32> to vector<8x10xf32>
    %15 = arith.addf %12, %14 : vector<8x10xf32>
    %cst_11 = arith.constant dense<0xFF800000> : vector<8xf32>
    %16 = vector.multi_reduction <maximumf>, %15, %cst_11 [1] : vector<8x10xf32> to vector<8xf32>
    %17 = vector.shape_cast %16 : vector<8xf32> to vector<8x1xf32>
    %18 = vector.broadcast %17 : vector<8x1xf32> to vector<8x10xf32>
    %19 = arith.subf %15, %18 : vector<8x10xf32>
    %20 = math.exp %19 : vector<8x10xf32>
    %cst_12 = arith.constant dense<0.000000e+00> : vector<8xf32>
    %21 = vector.multi_reduction <add>, %20, %cst_12 [1] : vector<8x10xf32> to vector<8xf32>
    %22 = vector.shape_cast %21 : vector<8xf32> to vector<8x1xf32>
    %23 = math.log %22 : vector<8x1xf32>
    %24 = vector.broadcast %23 : vector<8x1xf32> to vector<8x10xf32>
    %25 = arith.subf %19, %24 : vector<8x10xf32>
    %c0_13 = arith.constant 0 : index
    %c0_14 = arith.constant 0 : index
    %26 = vector.load %arg6[%c0_13, %c0_14] : memref<8x10xf32, #tpu.memory_space<vmem>>, vector<8x10xf32>
    tpu.vector_store %arg6[%c0_13, %c0_14], %25 {strides = array<i32>} : memref<8x10xf32, #tpu.memory_space<vmem>>, vector<8x10xf32>,
    return
  }
  func.func @transform_0(%arg0: i32) -> (i32, i32) {
    %c0_i32 = arith.constant 0 : i32
    %c0_i32_0 = arith.constant 0 : i32
    return %arg0, %c0_i32 : i32, i32
  }
  func.func @transform_1(%arg0: i32) -> (i32, i32) {
    %c0_i32 = arith.constant 0 : i32
    %c0_i32_0 = arith.constant 0 : i32
    %c0_i32_1 = arith.constant 0 : i32
    return %c0_i32, %c0_i32_0 : i32, i32
  }
  func.func @transform_2(%arg0: i32) -> (i32, i32) {
    %c0_i32 = arith.constant 0 : i32
    %c0_i32_0 = arith.constant 0 : i32
    %c0_i32_1 = arith.constant 0 : i32
    return %c0_i32, %c0_i32_0 : i32, i32
  }
  func.func @transform_3(%arg0: i32) -> (i32, i32) {
    %c0_i32 = arith.constant 0 : i32
    %c0_i32_0 = arith.constant 0 : i32
    %c0_i32_1 = arith.constant 0 : i32
    return %c0_i32, %c0_i32_0 : i32, i32
  }
  func.func @transform_4(%arg0: i32) -> (i32, i32) {
    %c0_i32 = arith.constant 0 : i32
    %c0_i32_0 = arith.constant 0 : i32
    %c0_i32_1 = arith.constant 0 : i32
    return %c0_i32, %c0_i32_0 : i32, i32
  }
  func.func @transform_5(%arg0: i32) -> (i32, i32) {
    %c0_i32 = arith.constant 0 : i32
    %c0_i32_0 = arith.constant 0 : i32
    return %arg0, %c0_i32 : i32, i32
  }
}

</mosaic_0001>

<bundles_post_ra>
// kernel: tpu_custom_call.1
= control target key start
LH: loop header
LB: loop body
LE: loop exit
PB: predicated region body
PF: predicated region fallthrough
CT: control target
= control target key end

     0   :  { %v2032_v3 = vmov 0.0|0.0   ;;  %vm2033_vm0 = vmmov 0   ;;  %v2034_v10 = vmov 0.0   ;;  %s2639_s0 = inlined_call_operand.vmem [shape: f32[8,64], index: 0, kind: input, shape index: {}]   ;;  %s2640_s1 = inlined_call_operand.vmem [shape: f32[64,128], index: 1, kind: input, shape index: {}]   ;;  %s2641_s2 = inlined_call_operand.vmem [shape: f32[1,128], index: 2, kind: input, shape index: {}]   ;;  %s2642_s3 = inlined_call_operand.vmem [shape: f32[128,10], index: 3, kind: input, shape index: {}]   ;;  %s2643_s4 = inlined_call_operand.vmem [shape: f32[1,10], index: 4, kind: input, shape index: {}]   ;;  %s2644_s5 = inlined_call_operand.hbm [shape: f32[8,10], index: 5, kind: output, shape index: {}]  }
   0x1   :  { %v22_v0 = vld [vmem:[%s2640_s1] sm:$0xff]  ;;  %v23_v1 = vld [vmem:[%s2640_s1 + $0x8] sm:$0xff]  ;;  %v24_v2 = vld [vmem:[%s2640_s1 + $0x10] sm:$0xff]  ;;  %1759 = vmatprep.subr.bf16.mxu0 %v2032_v3  ;;  %1451 = vmatprep.mubr.msk.f32.mxu0 %vm2033_vm0, %v2034_v10 }
   0x2   :  { %v42_v4 = vand.u32 4294901760, %v22_v0  ;;  %v45_v5 = vand.u32 4294901760, %v23_v1  ;;  %v25_v6 = vld [vmem:[%s2640_s1 + $0x18] sm:$0xff]  ;;  %v48_v7 = vand.u32 4294901760, %v24_v2  ;;  %v26_v8 = vld [vmem:[%s2640_s1 + $0x20] sm:$0xff]  ;;  %v27_v9 = vld [vmem:[%s2640_s1 + $0x28] sm:$0xff]  ;;  %1855 = vmatprep.subr.bf16.mxu1 %v2032_v3  ;;  %1616 = vmatprep.mubr.msk.f32.mxu1 %vm2033_vm0, %v2034_v10 }
   0x3   :  { %v51_v11 = vand.u32 4294901760, %v25_v6  ;;  %v54_v12 = vand.u32 4294901760, %v26_v8  ;;  %v57_v13 = vand.u32 4294901760, %v27_v9  ;;  %v21_v18 = vld [vmem:[%s2639_s0] sm:$0xff] }
   0x4   :  { %v2090_v14 = vpack.c.bf16 %v45_v5, %v42_v4  ;;  %v2092_v15 = vsub.f32 %v22_v0, %v42_v4  ;;  %v2094_v16 = vsub.f32 %v23_v1, %v45_v5  ;;  %v2096_v17 = vsub.f32 %v24_v2, %v48_v7 }
   0x5   :  { %10 = vsyncpa [#allocation3], 0  ;;  %v2102_v19 = vpack.c.bf16 %v51_v11, %v48_v7  ;;  %v2104_v20 = vsub.f32 %v25_v6, %v51_v11  ;;  %vm37_vm1 = vcmask 523264   ;;  %v28_v21 = vld [vmem:[%s2640_s1 + $0x30] sm:$0xff]  ;;  %v29_v22 = vld [vmem:[%s2640_s1 + $0x38] sm:$0xff]  ;;  %v2115_v26 = vpack.c.bf16 %v57_v13, %v54_v12 }
   0x6   :  { %1761 = vmatpush3.bf16.msra.mxu0 %v2090_v14  ;;  %v39_v23 = vsel %vm37_vm1, %v21_v18, 0  ;;  %v127_v24 = vand.u32 4294901760, %v2092_v15  ;;  %v134_v25 = vand.u32 4294901760, %v2094_v16  ;;  %v141_v28 = vand.u32 4294901760, %v2096_v17  ;;  %v2159_v48 = vld [vmem:[%s2642_s3] sm:$0xff]  ;;  %v2164_v49 = vld [vmem:[%s2642_s3 + $0x8] sm:$0xff] }
   0x7   :  { %1762 = vmatprep.subr.bf16.mxu0 %v2032_v3  ;;  %v2117_v27 = vand.u32 4294901760, %v39_v23  ;;  %v2120_v29 = vsub.f32 %v26_v8, %v54_v12  ;;  %v2122_v30 = vsub.f32 %v27_v9, %v57_v13  ;;  %v60_v33 = vand.u32 4294901760, %v28_v21 }
   0x8   :  { %v128_v31 = vsub.f32 %v2092_v15, %v127_v24  ;;  %v135_v32 = vsub.f32 %v2094_v16, %v134_v25  ;;  %v63_v34 = vand.u32 4294901760, %v29_v22  ;;  %v148_v36 = vand.u32 4294901760, %v2104_v20 }
   0x9   :  { %v2132_v35 = vsub.f32 %v39_v23, %v2117_v27  ;;  %v2136_v37 = vsub.f32 %v28_v21, %v60_v33  ;;  %v142_v39 = vsub.f32 %v2096_v17, %v141_v28  ;;  %v155_v42 = vand.u32 4294901760, %v2120_v29 }
   0xa   :  { %1764 = vmatpush3.bf16.msra.mxu0 %v2102_v19  ;;  %v129_v40 = vand.u32 4294901760, %v128_v31  ;;  %v136_v41 = vand.u32 4294901760, %v135_v32  ;;  %v162_v43 = vand.u32 4294901760, %v2122_v30  ;;  %v2145_v44 = vpack.c.bf16 %v63_v34, %v60_v33 }
   0xb   :  { %1765 = vmatprep.subr.bf16.mxu0 %v2032_v3  ;;  %v116_v38 = vand.u32 4294901760, %v2132_v35  ;;  %v2147_v45 = vsub.f32 %v29_v22, %v63_v34  ;;  %v149_v47 = vsub.f32 %v2104_v20, %v148_v36  ;;  %v143_v50 = vand.u32 4294901760, %v142_v39 }
   0xc   :  { %v169_v51 = vand.u32 4294901760, %v2136_v37  ;;  %v1772_v53 = vpack.c.bf16 %v136_v41, %v129_v40  ;;  %v156_v54 = vsub.f32 %v2120_v29, %v155_v42  ;;  %v163_v55 = vsub.f32 %v2122_v30, %v162_v43  ;;  %v2320_v40 = vld [vmem:[%s2642_s3 + $0x30] sm:$0xff]  ;;  %v2325_v41 = vld [vmem:[%s2642_s3 + $0x38] sm:$0xff] }
   0xd   :  { %v117_v46 = vsub.f32 %v2132_v35, %v116_v38  ;;  %v150_v56 = vand.u32 4294901760, %v149_v47  ;;  %v176_v57 = vand.u32 4294901760, %v2147_v45  ;;  %v608_v58 = vand.u32 4294901760, %v2159_v48 }
   0xe   :  { %1767 = vmatpush3.bf16.msra.mxu0 %v2115_v26  ;;  %v611_v59 = vand.u32 4294901760, %v2164_v49  ;;  %v157_v62 = vand.u32 4294901760, %v156_v54  ;;  %v164_v63 = vand.u32 4294901760, %v163_v55  ;;  %v170_v0 = vsub.f32 %v2136_v37, %v169_v51  ;;  %v2350_v55 = vld [vmem:[%s2642_s3 + $0x40] sm:$0xff] }
   0xf   :  { %1768 = vmatprep.subr.bf16.mxu0 %v2032_v3  ;;  %v118_v52 = vand.u32 4294901760, %v117_v46  ;;  %v2181_v60 = vsub.f32 %v2159_v48, %v608_v58  ;;  %v1775_v1 = vpack.c.bf16 %v150_v56, %v143_v50  ;;  %v177_v2 = vsub.f32 %v2147_v45, %v176_v57  ;;  %v2355_v56 = vld [vmem:[%s2642_s3 + $0x48] sm:$0xff]  ;;  %v2392_v48 = vld [vmem:[%s2642_s3 + $0x58] sm:$0xff] }
  0x10   :  { %v2186_v61 = vsub.f32 %v2164_v49, %v611_v59  ;;  %v171_v8 = vand.u32 4294901760, %v170_v0  ;;  %v1778_v9 = vpack.c.bf16 %v164_v63, %v157_v62  ;;  %v1784_v22 = vpack.c.bf16 %v2094_v16, %v2092_v15 }
  0x11   :  { %v701_v4 = vand.u32 4294901760, %v2181_v60  ;;  %v178_v11 = vand.u32 4294901760, %v177_v2  ;;  %v1787_v23 = vpack.c.bf16 %v2104_v20, %v2096_v17  ;;  %v1790_v31 = vpack.c.bf16 %v2122_v30, %v2120_v29  ;;  %v587_v17 = vld [vmem:[%s2642_s3 + $0x18] sm:$0xff] }
  0x12   :  { %1770 = vmatpush3.bf16.msra.mxu0 %v2145_v44  ;;  %v708_v5 = vand.u32 4294901760, %v2186_v61  ;;  %v1793_v32 = vpack.c.bf16 %v2147_v45, %v2136_v37  ;;  %v1808_v33 = vpack.c.bf16 %v134_v25, %v127_v24  ;;  %v1811_v34 = vpack.c.bf16 %v148_v36, %v141_v28 }
  0x13   :  { %1771 = vmatprep.subr.bf16.mxu0 %v2032_v3  ;;  %v702_v6 = vsub.f32 %v2181_v60, %v701_v4  ;;  %v1781_v21 = vpack.c.bf16 %v178_v11, %v171_v8  ;;  %v1814_v15 = vpack.c.bf16 %v162_v43, %v155_v42  ;;  %v1817_v16 = vpack.c.bf16 %v176_v57, %v169_v51 }
  0x14   :  { %v709_v7 = vsub.f32 %v2186_v61, %v708_v5  ;;  %v617_v20 = vand.u32 4294901760, %v587_v17  ;;  %v626_v46 = vand.u32 4294901760, %v2320_v40  ;;  %v629_v47 = vand.u32 4294901760, %v2325_v41 }
  0x15   :  { %1452 = vmatmul.mubr.f32.vlgmr.msra.gmra.mrb[0].mxu0 %v118_v52  ;;  %v703_v12 = vand.u32 4294901760, %v702_v6  ;;  %v632_v63 = vand.u32 4294901760, %v2350_v55  ;;  %v635_v0 = vand.u32 4294901760, %v2355_v56  ;;  %vm1248_vm2 = vcmask 80896  }
  0x16   :  { %1773 = vmatpush3.bf16.msra.mxu0 %v1772_v53  ;;  %1470 = vmatprep.mubr.msk.f32.mxu0 %vm2033_vm0, %v2034_v10  ;;  %v710_v13 = vand.u32 4294901760, %v709_v7  ;;  %v2285_v25 = vsub.f32 %v587_v17, %v617_v20  ;;  %v2340_v53 = vsub.f32 %v2320_v40, %v626_v46  ;;  %v2345_v54 = vsub.f32 %v2325_v41, %v629_v47 }
  0x17   :  { %1774 = vmatprep.subr.bf16.mxu0 %v2032_v3  ;;  %v2365_v7 = vsub.f32 %v2350_v55, %v632_v63  ;;  %v2370_v8 = vsub.f32 %v2355_v56, %v635_v0  ;;  %v2480_v41 = vpack.c.bf16 %v635_v0, %v632_v63 }
  0x18   :  { %v1856_v18 = vpack.c.bf16 %v710_v13, %v703_v12  ;;  %v722_v29 = vand.u32 4294901760, %v2285_v25  ;;  %v750_v2 = vand.u32 4294901760, %v2345_v54  ;;  %v2387_v13 = vld [vmem:[%s2642_s3 + $0x50] sm:$0xff] }
  0x19   :  { %v757_v49 = vand.u32 4294901760, %v2365_v7 }
  0x1a   :  { %1776 = vmatpush3.bf16.msra.mxu0 %v1775_v1  ;;  %1857 = vmatpush3.bf16.msra.mxu1 %v1856_v18  ;;  %v723_v37 = vsub.f32 %v2285_v25, %v722_v29  ;;  %v743_v1 = vand.u32 4294901760, %v2340_v53  ;;  %v751_v12 = vsub.f32 %v2345_v54, %v750_v2  ;;  %v641_v18 = vand.u32 4294901760, %v2392_v48 }
  0x1b   :  { %1777 = vmatprep.subr.bf16.mxu0 %v2032_v3  ;;  %1858 = vmatprep.subr.bf16.mxu1 %v2032_v3 }
  0x1c   :  { %v724_v43 = vand.u32 4294901760, %v723_v37  ;;  %v744_v11 = vsub.f32 %v2340_v53, %v743_v1 }
  0x1e   :  { %1779 = vmatpush3.bf16.msra.mxu0 %v1778_v9  ;;  %v2376_v9 = vpack.c.bf16 %v611_v59, %v608_v58  ;;  %v764_v58 = vand.u32 4294901760, %v2370_v8  ;;  %v638_v59 = vand.u32 4294901760, %v2387_v13 }
  0x1f   :  { %1780 = vmatprep.subr.bf16.mxu0 %v2032_v3 }
  0x20   :  { %v2495_v55 = vpack.c.bf16 %v641_v18, %v638_v59 }
  0x22   :  { %1782 = vmatpush3.bf16.msra.mxu0 %v1781_v21  ;;  %v745_v21 = vand.u32 4294901760, %v744_v11  ;;  %v599_v11 = vld [vmem:[%s2642_s3 + $0x78] sm:$0xff] }
  0x23   :  { %1783 = vmatprep.subr.bf16.mxu0 %v2032_v3 }
  0x25   :  { %1471 = vmatmul.mubr.f32.vlgmr.msra.gmra.mrb[0].mxu0 %v2117_v27 }
  0x26   :  { %1785 = vmatpush3.bf16.msra.mxu0 %v1784_v22  ;;  %1489 = vmatprep.mubr.msk.f32.mxu0 %vm2033_vm0, %v2034_v10  ;;  %v752_v22 = vand.u32 4294901760, %v751_v12 }
  0x27   :  { %1786 = vmatprep.subr.bf16.mxu0 %v2032_v3 }
  0x2a   :  { %1788 = vmatpush3.bf16.msra.mxu0 %v1787_v23  ;;  %v758_v23 = vsub.f32 %v2365_v7, %v757_v49 }
  0x2b   :  { %1789 = vmatprep.subr.bf16.mxu0 %v2032_v3 }
  0x2c   :  { %v759_v17 = vand.u32 4294901760, %v758_v23 }
  0x2e   :  { %1791 = vmatpush3.bf16.msra.mxu0 %v1790_v31  ;;  %v765_v31 = vsub.f32 %v2370_v8, %v764_v58 }
  0x2f   :  { %1792 = vmatprep.subr.bf16.mxu0 %v2032_v3 }
  0x32   :  { %1794 = vmatpush3.bf16.msra.mxu0 %v1793_v32  ;;  %v2410_v32 = vsub.f32 %v2387_v13, %v638_v59  ;;  %v1889_v59 = vpack.c.bf16 %v2345_v54, %v2340_v53 }
  0x33   :  { %1795 = vmatprep.subr.bf16.mxu0 %v2032_v3 }
  0x34   :  { %v771_v37 = vand.u32 4294901760, %v2410_v32 }
  0x35   :  { %1490 = vmatmul.mubr.f32.vlgmr.msra.gmra.mrb[0].mxu0 %v2132_v35 }
  0x36   :  { %1797 = vmatpush3.bf16.msra.mxu0 %v2090_v14  ;;  %1508 = vmatprep.mubr.msk.f32.mxu0 %vm2033_vm0, %v2034_v10 }
  0x37   :  { %1798 = vmatprep.subr.bf16.mxu0 %v2032_v3 }
  0x3a   :  { %1800 = vmatpush3.bf16.msra.mxu0 %v2102_v19 }
  0x3b   :  { %1801 = vmatprep.subr.bf16.mxu0 %v2032_v3 }
  0x3e   :  { %1803 = vmatpush3.bf16.msra.mxu0 %v2115_v26 }
  0x3f   :  { %1804 = vmatprep.subr.bf16.mxu0 %v2032_v3 }
  0x42   :  { %1806 = vmatpush3.bf16.msra.mxu0 %v2145_v44 }
  0x43   :  { %1807 = vmatprep.subr.bf16.mxu0 %v2032_v3 }
  0x45   :  { %1509 = vmatmul.mubr.f32.vlgmr.msra.gmra.mrb[0].mxu0 %v116_v38 }
  0x46   :  { %1809 = vmatpush3.bf16.msra.mxu0 %v1808_v33  ;;  %1527 = vmatprep.mubr.msk.f32.mxu0 %vm2033_vm0, %v2034_v10  ;;  %v2415_v33 = vsub.f32 %v2392_v48, %v641_v18  ;;  %v1892_v18 = vpack.c.bf16 %v2370_v8, %v2365_v7 }
  0x47   :  { %1810 = vmatprep.subr.bf16.mxu0 %v2032_v3 }
  0x4a   :  { %1812 = vmatpush3.bf16.msra.mxu0 %v1811_v34  ;;  %v1865_v34 = vpack.c.bf16 %v752_v22, %v745_v21 }
  0x4b   :  { %1813 = vmatprep.subr.bf16.mxu0 %v2032_v3 }
  0x4e   :  { %1815 = vmatpush3.bf16.msra.mxu0 %v1814_v15 }
  0x4f   :  { %1816 = vmatprep.subr.bf16.mxu0 %v2032_v3 }
  0x52   :  { %1818 = vmatpush3.bf16.msra.mxu0 %v1817_v16  ;;  %v596_v16 = vld [vmem:[%s2642_s3 + $0x60] sm:$0xff] }
  0x53   :  { %1819 = vmatprep.subr.bf16.mxu0 %v2032_v3 }
  0x55   :  { %1528 = vmatmul.mubr.f32.vlgmr.msra.gmra.mrb[0].mxu0 %v2117_v27 }
  0x56   :  { %1821 = vmatpush3.bf16.msra.mxu0 %v2090_v14  ;;  %1546 = vmatprep.mubr.msk.f32.mxu0 %vm2033_vm0, %v2034_v10  ;;  %v2276_v14 = vld [vmem:[%s2642_s3 + $0x10] sm:$0xff] }
  0x57   :  { %1822 = vmatprep.subr.bf16.mxu0 %v2032_v3 }
  0x5a   :  { %1824 = vmatpush3.bf16.msra.mxu0 %v2102_v19  ;;  %v614_v19 = vand.u32 4294901760, %v2276_v14 }
  0x5b   :  { %1825 = vmatprep.subr.bf16.mxu0 %v2032_v3 }
  0x5c   :  { %v2283_v24 = vsub.f32 %v2276_v14, %v614_v19  ;;  %v2417_v15 = vpack.c.bf16 %v617_v20, %v614_v19  ;;  %v597_v14 = vld [vmem:[%s2642_s3 + $0x68] sm:$0xff] }
  0x5d   :  { %v647_v19 = vand.u32 4294901760, %v597_v14 }
  0x5e   :  { %1827 = vmatpush3.bf16.msra.mxu0 %v2115_v26  ;;  %v2290_v26 = vld [vmem:[%s2642_s3 + $0x20] sm:$0xff]  ;;  %v715_v28 = vand.u32 4294901760, %v2283_v24  ;;  %v1883_v0 = vpack.c.bf16 %v2285_v25, %v2283_v24 }
  0x5f   :  { %1828 = vmatprep.subr.bf16.mxu0 %v2032_v3  ;;  %v620_v30 = vand.u32 4294901760, %v2290_v26 }
  0x60   :  { %v716_v36 = vsub.f32 %v2283_v24, %v715_v28 }
  0x61   :  { %v2310_v38 = vsub.f32 %v2290_v26, %v620_v30  ;;  %v653_v26 = vand.u32 4294901760, %v599_v11 }
  0x62   :  { %1830 = vmatpush3.bf16.msra.mxu0 %v2145_v44  ;;  %v717_v42 = vand.u32 4294901760, %v716_v36  ;;  %v766_v36 = vand.u32 4294901760, %v765_v31 }
  0x63   :  { %1831 = vmatprep.subr.bf16.mxu0 %v2032_v3  ;;  %v729_v44 = vand.u32 4294901760, %v2310_v38  ;;  %v2459_v31 = vsub.f32 %v599_v11, %v653_v26 }
  0x64   :  { %v1859_v50 = vpack.c.bf16 %v724_v43, %v717_v42  ;;  %v778_v42 = vand.u32 4294901760, %v2415_v33  ;;  %v644_v43 = vand.u32 4294901760, %v596_v16  ;;  %v1868_v20 = vpack.c.bf16 %v766_v36, %v759_v17 }
  0x65   :  { %1547 = vmatmul.mubr.f32.vlgmr.msra.gmra.mrb[0].mxu0 %v2117_v27  ;;  %v2295_v27 = vld [vmem:[%s2642_s3 + $0x28] sm:$0xff]  ;;  %v730_v51 = vsub.f32 %v2310_v38, %v729_v44  ;;  %v806_v36 = vand.u32 4294901760, %v2459_v31 }
  0x66   :  { %1581 = vmatprep.mubr.msk.f32.mxu0 %vm2033_vm0, %v2034_v10  ;;  %v623_v35 = vand.u32 4294901760, %v2295_v27  ;;  %1860 = vmatpush3.bf16.msra.mxu1 %v1859_v50  ;;  %v772_v50 = vsub.f32 %v2410_v32, %v771_v37  ;;  %v2502_v63 = vpack.c.bf16 %v647_v19, %v644_v43 }
  0x67   :  { %v731_v57 = vand.u32 4294901760, %v730_v51  ;;  %1861 = vmatprep.subr.bf16.mxu1 %v2032_v3  ;;  %1833 = vmatpush3.bf16.msra.mxu0 %v2376_v9  ;;  %v779_v51 = vsub.f32 %v2415_v33, %v778_v42 }
  0x68   :  { %v2315_v39 = vsub.f32 %v2295_v27, %v623_v35  ;;  %1834 = vmatprep.subr.bf16.mxu0 %v2032_v3  ;;  %v773_v12 = vand.u32 4294901760, %v772_v50 }
  0x69   :  { %v780_v21 = vand.u32 4294901760, %v779_v51 }
  0x6a   :  { %v736_v45 = vand.u32 4294901760, %v2315_v39  ;;  %v1886_v48 = vpack.c.bf16 %v2315_v39, %v2310_v38 }
  0x6b   :  { %1836 = vmatpush3.bf16.msra.mxu0 %v2417_v15 }
  0x6c   :  { %v737_v52 = vsub.f32 %v2315_v39, %v736_v45  ;;  %1837 = vmatprep.subr.bf16.mxu0 %v2032_v3 }
  0x6e   :  { %v738_v62 = vand.u32 4294901760, %v737_v52  ;;  %v2440_v52 = vpack.c.bf16 %v623_v35, %v620_v30  ;;  %v1871_v35 = vpack.c.bf16 %v780_v21, %v773_v12  ;;  %v1276_v12 = vld [vmem:[%s2641_s2] ss:$0 sm:$0xff] }
  0x70   :  { %v1862_v6 = vpack.c.bf16 %v738_v62, %v731_v57  ;;  %v2442_v57 = vsub.f32 %v596_v16, %v644_v43  ;;  %v2444_v62 = vsub.f32 %v597_v14, %v647_v19  ;;  %1839 = vmatpush3.bf16.msra.mxu0 %v2440_v52  ;;  %v1895_v43 = vpack.c.bf16 %v2415_v33, %v2410_v32 }
  0x71   :  { %1840 = vmatprep.subr.bf16.mxu0 %v2032_v3 }
  0x72   :  { %1863 = vmatpush3.bf16.msra.mxu1 %v1862_v6  ;;  %v598_v6 = vld [vmem:[%s2642_s3 + $0x70] sm:$0xff]  ;;  %v785_v27 = vand.u32 4294901760, %v2442_v57  ;;  %v792_v30 = vand.u32 4294901760, %v2444_v62  ;;  %v1898_v19 = vpack.c.bf16 %v2444_v62, %v2442_v57 }
  0x73   :  { %1864 = vmatprep.subr.bf16.mxu1 %v2032_v3  ;;  %v650_v22 = vand.u32 4294901760, %v598_v6 }
  0x74   :  { %v786_v16 = vsub.f32 %v2442_v57, %v785_v27  ;;  %v793_v14 = vsub.f32 %v2444_v62, %v792_v30  ;;  %v1946_v24 = vpack.c.bf16 %v792_v30, %v785_v27 }
  0x75   :  { %v2457_v23 = vsub.f32 %v598_v6, %v650_v22  ;;  %v2508_v13 = vpack.c.bf16 %v653_v26, %v650_v22 }
  0x76   :  { %1866 = vmatpush3.bf16.msra.mxu1 %v1865_v34  ;;  %v2465_v34 = vpack.c.bf16 %v629_v47, %v626_v46  ;;  %v787_v40 = vand.u32 4294901760, %v786_v16  ;;  %v807_v47 = vsub.f32 %v2459_v31, %v806_v36 }
  0x77   :  { %1867 = vmatprep.subr.bf16.mxu1 %v2032_v3  ;;  %v799_v17 = vand.u32 4294901760, %v2457_v23  ;;  %v1901_v11 = vpack.c.bf16 %v2459_v31, %v2457_v23 }
  0x78   :  { %1842 = vmatpush3.bf16.msra.mxu0 %v2465_v34  ;;  %v808_v6 = vand.u32 4294901760, %v807_v47 }
  0x79   :  { %1843 = vmatprep.subr.bf16.mxu0 %v2032_v3  ;;  %v800_v46 = vsub.f32 %v2457_v23, %v799_v17  ;;  %v1949_v25 = vpack.c.bf16 %v806_v36, %v799_v17 }
  0x7a   :  { %1869 = vmatpush3.bf16.msra.mxu1 %v1868_v20  ;;  %v794_v20 = vand.u32 4294901760, %v793_v14 }
  0x7b   :  { %1870 = vmatprep.subr.bf16.mxu1 %v2032_v3  ;;  %v801_v51 = vand.u32 4294901760, %v800_v46 }
  0x7c   :  { %v1874_v50 = vpack.c.bf16 %v794_v20, %v787_v40  ;;  %1845 = vmatpush3.bf16.msra.mxu0 %v2480_v41  ;;  %v1880_v20 = vpack.c.bf16 %v2186_v61, %v2181_v60  ;;  %v1934_v60 = vpack.c.bf16 %v736_v45, %v729_v44  ;;  %v1937_v61 = vpack.c.bf16 %v750_v2, %v743_v1 }
  0x7d   :  { %1846 = vmatprep.subr.bf16.mxu0 %v2032_v3  ;;  %v1877_v56 = vpack.c.bf16 %v808_v6, %v801_v51 }
  0x7e   :  { %1872 = vmatpush3.bf16.msra.mxu1 %v1871_v35 }
  0x7f   :  { %1873 = vmatprep.subr.bf16.mxu1 %v2032_v3 }
  0x80   :  { %1848 = vmatpush3.bf16.msra.mxu0 %v2495_v55 }
  0x81   :  { %1849 = vmatprep.subr.bf16.mxu0 %v2032_v3 }
  0x82   :  { %1875 = vmatpush3.bf16.msra.mxu1 %v1874_v50 }
  0x83   :  { %1876 = vmatprep.subr.bf16.mxu1 %v2032_v3 }
  0x84   :  { %1851 = vmatpush3.bf16.msra.mxu0 %v2502_v63 }
  0x85   :  { %1852 = vmatprep.subr.bf16.mxu0 %v2032_v3 }
  0x86   :  { %1878 = vmatpush3.bf16.msra.mxu1 %v1877_v56  ;;  %v1928_v56 = vpack.c.bf16 %v708_v5, %v701_v4  ;;  %v1940_v4 = vpack.c.bf16 %v764_v58, %v757_v49  ;;  %v1943_v5 = vpack.c.bf16 %v778_v42, %v771_v37 }
  0x87   :  { %1879 = vmatprep.subr.bf16.mxu1 %v2032_v3 }
  0x88   :  { %1854 = vmatpush3.bf16.msra.mxu0 %v2508_v13 }
 0x138   :  { %v574_v21 = vpop.f32.mrb[0].mxu0 }
 0x139   :  { %v1975_v22 = vadd.f32 %v1276_v12, %v574_v21  ;;  %v1548_v26 = vpop.f32.mrb[1].mxu0 }
 0x13b   :  { %v1277_v35 = vmul.f32 -1.442695, %v1975_v22 }
 0x13d   :  { %2000 = vpow2.f32 %v1277_v35 }
 0x147   :  { %v2001_v16 = vpop.eup %2000 }
 0x148   :  { %v581_v14 = vadd.f32 1.0, %v2001_v16 }
 0x14a   :  { %2002 = vrcp.f32 %v581_v14 }
 0x154   :  { %v2003_v40 = vpop.eup %2002 }
 0x155   :  { %v2528_v46 = vand.u32 4294901760, %v2003_v40 }
 0x157   :  { %1617 = vmatmul.mubr.f32.vlgmr.msra.gmra.mrb[0].mxu1 %v2528_v46  ;;  %v689_v47 = vsub.f32 %v2003_v40, %v2528_v46 }
 0x158   :  { %1881 = vmatpush3.bf16.msra.mxu1 %v1880_v20  ;;  %1651 = vmatprep.mubr.msk.f32.mxu1 %vm2033_vm0, %v2034_v10 }
 0x159   :  { %1882 = vmatprep.subr.bf16.mxu1 %v2032_v3  ;;  %v690_v50 = vand.u32 4294901760, %v689_v47 }
 0x15b   :  { %v691_v51 = vsub.f32 %v689_v47, %v690_v50 }
 0x15c   :  { %1884 = vmatpush3.bf16.msra.mxu1 %v1883_v0  ;;  %v1931_v0 = vpack.c.bf16 %v722_v29, %v715_v28  ;;  %v1278_v29 = vld [vmem:[%s2643_s4] ss:$0 sm:$0xff]  ;;  %s2035_s4 = smov [#allocation2]  }
 0x15d   :  { %1885 = vmatprep.subr.bf16.mxu1 %v2032_v3  ;;  %v692_v6 = vand.u32 4294901760, %v691_v51  ;;  %s1268_s16 = sshll.u32 %s2035_s4, 4  ;;  %s1269_s16 = int_to_ptr.vmem [resolvable:$true] %s1268_s16 }
 0x15e   :  { %s2008_s17 = scalar_lea.vmem %s1269_s16, 128  ;;  %p2013_p1 = scmp.lt.s32.totalorder %s1269_s16, %s1269_s16 }
 0x15f   :  { %1582 = vmatmul.mubr.f32.vlgmr.msra.gmra.mrb[2].mxu0 %v692_v6  ;;  %p2009_p0 = scmp.ne.s32.totalorder %s1269_s16, %s2008_s17  ;;  %p2014_p2 = scmp.lt.s32.totalorder %s2008_s17, %s2008_s17 }
 0x160   :  { %1887 = vmatpush3.bf16.msra.mxu1 %v1886_v48 }
 0x161   :  { %1888 = vmatprep.subr.bf16.mxu1 %v2032_v3  ;;  %p2015_p3 = por %p2014_p2, %p2013_p1 }
 0x163   :  { %p2016_p4 = pnand %p2015_p3, %p2009_p0 }
 0x164   :  { %1890 = vmatpush3.bf16.msra.mxu1 %v1889_v59 }
 0x165   :  { %1891 = vmatprep.subr.bf16.mxu1 %v2032_v3 }
 0x168   :  { %1893 = vmatpush3.bf16.msra.mxu1 %v1892_v18 }
 0x169   :  { %1894 = vmatprep.subr.bf16.mxu1 %v2032_v3 }
 0x16c   :  { %1896 = vmatpush3.bf16.msra.mxu1 %v1895_v43 }
 0x16d   :  { %1897 = vmatprep.subr.bf16.mxu1 %v2032_v3 }
 0x170   :  { %1899 = vmatpush3.bf16.msra.mxu1 %v1898_v19 }
 0x171   :  { %1900 = vmatprep.subr.bf16.mxu1 %v2032_v3 }
 0x174   :  { %1902 = vmatpush3.bf16.msra.mxu1 %v1901_v11 }
 0x175   :  { %1903 = vmatprep.subr.bf16.mxu1 %v2032_v3 }
 0x177   :  { %1652 = vmatmul.mubr.f32.vlgmr.msra.gmra.mrb[0].mxu1 %v689_v47 }
 0x178   :  { %1905 = vmatpush3.bf16.msra.mxu1 %v2376_v9  ;;  %1686 = vmatprep.mubr.msk.f32.mxu1 %vm2033_vm0, %v2034_v10 }
 0x179   :  { %1906 = vmatprep.subr.bf16.mxu1 %v2032_v3 }
 0x17c   :  { %1908 = vmatpush3.bf16.msra.mxu1 %v2417_v15 }
 0x17d   :  { %1909 = vmatprep.subr.bf16.mxu1 %v2032_v3 }
 0x180   :  { %1911 = vmatpush3.bf16.msra.mxu1 %v2440_v52 }
 0x181   :  { %1912 = vmatprep.subr.bf16.mxu1 %v2032_v3 }
 0x184   :  { %1914 = vmatpush3.bf16.msra.mxu1 %v2465_v34 }
 0x185   :  { %1915 = vmatprep.subr.bf16.mxu1 %v2032_v3 }
 0x188   :  { %1917 = vmatpush3.bf16.msra.mxu1 %v2480_v41 }
 0x189   :  { %1918 = vmatprep.subr.bf16.mxu1 %v2032_v3 }
 0x18c   :  { %1920 = vmatpush3.bf16.msra.mxu1 %v2495_v55 }
 0x18d   :  { %1921 = vmatprep.subr.bf16.mxu1 %v2032_v3 }
 0x190   :  { %1923 = vmatpush3.bf16.msra.mxu1 %v2502_v63 }
 0x191   :  { %1924 = vmatprep.subr.bf16.mxu1 %v2032_v3 }
 0x194   :  { %1926 = vmatpush3.bf16.msra.mxu1 %v2508_v13 }
 0x195   :  { %1927 = vmatprep.subr.bf16.mxu1 %v2032_v3 }
 0x197   :  { %1687 = vmatmul.mubr.f32.vlgmr.msra.gmra.mrb[0].mxu1 %v690_v50 }
 0x198   :  { %1929 = vmatpush3.bf16.msra.mxu1 %v1928_v56  ;;  %1721 = vmatprep.mubr.msk.f32.mxu1 %vm2033_vm0, %v2034_v10 }
 0x199   :  { %1930 = vmatprep.subr.bf16.mxu1 %v2032_v3 }
 0x19c   :  { %1932 = vmatpush3.bf16.msra.mxu1 %v1931_v0 }
 0x19d   :  { %1933 = vmatprep.subr.bf16.mxu1 %v2032_v3 }
 0x1a0   :  { %1935 = vmatpush3.bf16.msra.mxu1 %v1934_v60 }
 0x1a1   :  { %1936 = vmatprep.subr.bf16.mxu1 %v2032_v3 }
 0x1a4   :  { %1938 = vmatpush3.bf16.msra.mxu1 %v1937_v61 }
 0x1a5   :  { %1939 = vmatprep.subr.bf16.mxu1 %v2032_v3 }
 0x1a8   :  { %1941 = vmatpush3.bf16.msra.mxu1 %v1940_v4 }
 0x1a9   :  { %1942 = vmatprep.subr.bf16.mxu1 %v2032_v3 }
 0x1ac   :  { %1944 = vmatpush3.bf16.msra.mxu1 %v1943_v5 }
 0x1ad   :  { %1945 = vmatprep.subr.bf16.mxu1 %v2032_v3 }
 0x1b0   :  { %1947 = vmatpush3.bf16.msra.mxu1 %v1946_v24 }
 0x1b1   :  { %1948 = vmatprep.subr.bf16.mxu1 %v2032_v3 }
 0x1b4   :  { %1950 = vmatpush3.bf16.msra.mxu1 %v1949_v25 }
 0x1b5   :  { %1951 = vmatprep.subr.bf16.mxu1 %v2032_v3 }
 0x1b7   :  { %1722 = vmatmul.mubr.f32.vlgmr.msra.gmra.mrb[0].mxu1 %v2528_v46 }
 0x1b8   :  { %1953 = vmatpush3.bf16.msra.mxu1 %v2376_v9  ;;  %1756 = vmatprep.mubr.msk.f32.mxu1 %vm2033_vm0, %v2034_v10 }
 0x1b9   :  { %1954 = vmatprep.subr.bf16.mxu1 %v2032_v3 }
 0x1bc   :  { %1956 = vmatpush3.bf16.msra.mxu1 %v2417_v15 }
 0x1bd   :  { %1957 = vmatprep.subr.bf16.mxu1 %v2032_v3 }
 0x1c0   :  { %1959 = vmatpush3.bf16.msra.mxu1 %v2440_v52 }
 0x1c1   :  { %1960 = vmatprep.subr.bf16.mxu1 %v2032_v3 }
 0x1c4   :  { %1962 = vmatpush3.bf16.msra.mxu1 %v2465_v34 }
 0x1c5   :  { %1963 = vmatprep.subr.bf16.mxu1 %v2032_v3 }
 0x1c8   :  { %1965 = vmatpush3.bf16.msra.mxu1 %v2480_v41 }
 0x1c9   :  { %1966 = vmatprep.subr.bf16.mxu1 %v2032_v3 }
 0x1cc   :  { %1968 = vmatpush3.bf16.msra.mxu1 %v2495_v55 }
 0x1cd   :  { %1969 = vmatprep.subr.bf16.mxu1 %v2032_v3 }
 0x1d0   :  { %1971 = vmatpush3.bf16.msra.mxu1 %v2502_v63 }
 0x1d1   :  { %1972 = vmatprep.subr.bf16.mxu1 %v2032_v3 }
 0x1d4   :  { %1974 = vmatpush3.bf16.msra.mxu1 %v2508_v13 }
 0x1d7   :  { %1757 = vmatmul.mubr.f32.vlgmr.msra.gmra.mrb[0].mxu1 %v2528_v46 }
 0x232   :  { %v694_v10 = vpop.f32.mrb[2].mxu0 }
 0x233   :  { %v1583_v28 = vpop.f32.mrb[3].mxu0  ;;  %v695_v38 = vadd.f32 %v1278_v29, %v694_v10 }
 0x2aa   :  { %v1244_v39 = vpop.f32.mrb[0].mxu1 }
 0x2ab   :  { %v1977_v44 = vadd.f32 %v1244_v39, %v695_v38  ;;  %v1758_v45 = vpop.f32.mrb[1].mxu1 }
 0x2ad   :  { %v1249_v53 = vsel %vm1248_vm2, %v1977_v44, -inf }
 0x2ae   :  { %1250 = vmax.xlane.f32.xlu0 %v1249_v53 }
 0x33b   :  { %v1251_v54 = vpop.xlane.xlu0 %1250 }
 0x33c   :  { %v1252_v3 = vsub.f32 %v1977_v44, %v1251_v54 }
 0x33e   :  { %v1253_v1 = vmul.f32 1.442695, %v1252_v3 }
 0x340   :  { %2004 = vpow2.f32 %v1253_v1 }
 0x34a   :  { %v2005_v2 = vpop.eup %2004 }
 0x34b   :  { %v1255_v7 = vsel %vm1248_vm2, %v2005_v2, 0.0 }
 0x34c   :  { %1256 = vadd.xlane.f32.xlu0 %v1255_v7 }
 0x3d9   :  { %v1257_v8 = vpop.xlane.xlu0 %1256 }
 0x3da   :  { %2006 = vlog2.f32 %v1257_v8 }
 0x3e4   :  { %v2007_v9 = vpop.eup %2006 }
 0x3e5   :  { %v1259_v49 = vmul.f32 0.6931472, %v2007_v9 }
 0x3e7   :  { %v1260_v58 = vsub.f32 %v1252_v3, %v1259_v49 }
 0x3e9   :  { %1261 = vst.msk [vmem:[#allocation2] sm:$0xff] %vm1248_vm2, %v1260_v58 }
 0x3ea   :  { %2019 = shalt.err (!%p2016_p4)
}
 0x3eb   :  { %s2020_s20 = scalar_lea.hbm %s2644_s5, 128 }
 0x3ec   :  { %p2021_p5 = scmp.ne.s32.totalorder %s2644_s5, %s2020_s20  ;;  %p2024_p6 = scmp.lt.u32.totalorder %s2020_s20, %s2644_s5 }
 0x3ee   :  { %p2026_p7 = pnand %p2024_p6, %p2021_p5 }
 0x3f0   :  { %2029 = shalt.err (!%p2026_p7)
}
 0x3f1   :  { %1271 = dma.vmem_to_hbm [thread:$0]  %s1269_s16, 128, %s2644_s5, [#allocation3]  }
 0x3f2   :  { %2030 = dma.done.wait [#allocation3], 128  }
 0x3f3   :  { %2031 = vsyncadd [#allocation3], 4294967168 }
 0x3f4   :  { %1275 = vsyncpa [#allocation3], 1 }

</bundles_post_ra>
